<compile_context>
chip_gen: v6e
topology: v6e:2x2x1
jax: 0.10.0
libtpu: 0.0.40
codegen_flags: <defaults>
</compile_context>

<pallas_src>
import functools

import jax
import jax.numpy as jnp
from jax.experimental import pallas as pl
from jax.experimental.pallas import tpu as pltpu


def _attention_kernel(xq_ref, xkv_ref, wq_ref, wk_ref, wv_ref, wo_ref, bo_ref,
                      o_ref, *, heads, dh):
    f32, bf16 = jnp.float32, jnp.bfloat16

    xq = xq_ref[...].astype(bf16)      # (tq, D)  query rows of this tile
    xkv = xkv_ref[...].astype(bf16)    # (N,  D)  full sequence (keys / values)

    # Fused QKV projections: bf16 MXU operands, f32 accumulation.
    # Lane dim = inner = H*dh (lane dense for real model sizes); contraction = D.
    # The 1/sqrt(dh) softmax scale is already folded into Wq host-side.
    q_all = jnp.dot(xq, wq_ref[...], preferred_element_type=f32).astype(bf16)   # (tq, inner)
    k_all = jnp.dot(xkv, wk_ref[...], preferred_element_type=f32).astype(bf16)  # (N,  inner)
    v_all = jnp.dot(xkv, wv_ref[...], preferred_element_type=f32).astype(bf16)  # (N,  inner)

    acc = None
    for h in range(heads):             # static unroll over heads; weights stay VMEM-resident
        lo = h * dh
        q_h = q_all[:, lo:lo + dh]     # (tq, dh)
        k_h = k_all[:, lo:lo + dh]     # (N,  dh)
        v_h = v_all[:, lo:lo + dh]     # (N,  dh)

        # scores = q_h @ k_h^T  (contraction over dh); softmax statistics kept in f32.
        s = jax.lax.dot_general(q_h, k_h, (((1,), (1,)), ((), ())),
                                preferred_element_type=f32)                      # (tq, N)
        s = s - jnp.max(s, axis=-1, keepdims=True)
        e = jnp.exp(s)
        p = (e * pl.reciprocal(jnp.sum(e, axis=-1, keepdims=True),
                               approx=True)).astype(bf16)
        o_h = jnp.dot(p, v_h, preferred_element_type=f32)                        # (tq, dh)

        # Fused output projection: this head's contribution to the (tq, D) output.
        c = jnp.dot(o_h.astype(bf16), wo_ref[lo:lo + dh, :],
                    preferred_element_type=f32)                                  # (tq, D)
        acc = c if acc is None else acc + c

    o_ref[...] = (acc + bo_ref[...].astype(f32)).astype(o_ref.dtype)


def attention(x, w_qkv, w_out, b_out, *, heads):
    """x: (B, N, D). w_qkv: (D, 3*inner). w_out: (inner, D). b_out: (D,)."""
    B, N, D = x.shape
    three_inner = w_qkv.shape[1]
    inner = three_inner // 3
    dh = inner // heads
    scale = float(dh) ** -0.5

    # Query-row tile: one tile for short sequences, 128/256-row tiles otherwise
    # (gives megacore / v7x a parallel axis besides batch and bounds VMEM per step).
    if N % 256 == 0:
        tq = 256
    elif N % 128 == 0:
        tq = 128
    else:
        tq = N
    nq = N // tq

    # Host-side weight prep: split QKV, fold the softmax scale into Wq, cast to bf16.
    wq, wk, wv = jnp.split(w_qkv, 3, axis=-1)                  # each (D, inner)
    wq = (wq * scale).astype(jnp.bfloat16)
    wk = wk.astype(jnp.bfloat16)
    wv = wv.astype(jnp.bfloat16)
    wo = w_out.astype(jnp.bfloat16)                            # (inner, D)
    bo = b_out.reshape(1, D).astype(jnp.float32)               # bias added in f32

    flops = B * (2 * N * D * three_inner        # QKV projection
                 + 4 * N * N * inner            # q@k^T and attn@v across all heads
                 + 2 * N * inner * D)           # output projection
    bytes_accessed = (2 * B * N * D + B * N * D) * x.dtype.itemsize \
        + (wq.size + wk.size + wv.size + wo.size) * 2 + bo.size * 4   # weights fetched once
    cost = pl.CostEstimate(flops=int(flops),
                           transcendentals=int(B * heads * N * N),
                           bytes_accessed=int(bytes_accessed))

    kernel = functools.partial(_attention_kernel, heads=heads, dh=dh)

    return pl.pallas_call(
        kernel,
        out_shape=jax.ShapeDtypeStruct((B, N, D), x.dtype),
        grid_spec=pltpu.PrefetchScalarGridSpec(
            num_scalar_prefetch=0,
            grid=(B, nq),
            in_specs=[
                pl.BlockSpec((None, tq, D), lambda b, q: (b, q, 0)),   # x: query rows
                pl.BlockSpec((None, N, D), lambda b, q: (b, 0, 0)),    # x: full seq (K/V), constant over q
                pl.BlockSpec((D, inner), lambda b, q: (0, 0)),         # Wq (pre-scaled), VMEM-resident
                pl.BlockSpec((D, inner), lambda b, q: (0, 0)),         # Wk, resident
                pl.BlockSpec((D, inner), lambda b, q: (0, 0)),         # Wv, resident
                pl.BlockSpec((inner, D), lambda b, q: (0, 0)),         # Wo, resident
                pl.BlockSpec((1, D), lambda b, q: (0, 0)),             # out-proj bias
            ],
            out_specs=pl.BlockSpec((None, tq, D), lambda b, q: (b, q, 0)),
        ),
        compiler_params=pltpu.CompilerParams(
            dimension_semantics=("parallel", "parallel"),
        ),
        cost_estimate=cost,
    )(x, x, wq, wk, wv, wo, bo)


def attention_ref(x, w_qkv, w_out, b_out, *, heads):
    B, N, D = x.shape
    inner = w_qkv.shape[1] // 3
    dh = inner // heads
    scale = float(dh) ** -0.5
    qkv = x @ w_qkv
    q, k, v = jnp.split(qkv, 3, axis=-1)

    def split_heads(t):
        return t.reshape(B, N, heads, dh).transpose(0, 2, 1, 3)

    q, k, v = map(split_heads, (q, k, v))
    dots = jnp.einsum("bhid,bhjd->bhij", q, k) * scale
    attn = jax.nn.softmax(dots, axis=-1)
    out = jnp.einsum("bhij,bhjd->bhid", attn, v)
    out = out.transpose(0, 2, 1, 3).reshape(B, N, inner)
    return (out @ w_out + b_out).astype(x.dtype)


if __name__ == "__main__":
    B, N, D = 2, 8, 32             # batch, seq, dim
    heads, dim_head = 2, 16        # inner_dim = 32; project_out=True (heads != 1)
    inner = heads * dim_head

    key = jax.random.PRNGKey(0)
    kx, kqkv, kwo, kbo = jax.random.split(key, 4)
    x = jax.random.normal(kx, (B, N, D), dtype=jnp.float32)
    w_qkv = jax.random.normal(kqkv, (D, 3 * inner), dtype=jnp.float32) * (D ** -0.5)
    w_out = jax.random.normal(kwo, (inner, D), dtype=jnp.float32) * (inner ** -0.5)
    b_out = jax.random.normal(kbo, (D,), dtype=jnp.float32) * 0.01

    out = attention(x, w_qkv, w_out, b_out, heads=heads)
    out = jax.block_until_ready(out)

    ref = attention_ref(x, w_qkv, w_out, b_out, heads=heads)
    assert out.shape == (B, N, D)
    err = float(jnp.max(jnp.abs(out - ref)))
    # bf16 MXU operands (weights/activations/probabilities) vs a pure-f32 reference:
    # allow bf16-level tolerance; structural bugs would produce O(1) errors.
    assert jnp.allclose(out, ref, atol=5e-2, rtol=5e-2), f"mismatch vs reference (max abs err {err})"

    print("KERNEL_OK")
</pallas_src>

<mosaic_0001>
module attributes {stable_mosaic.version = 11 : i64} {
  func.func @_attention_kernel(%arg0: i32, %arg1: i32, %arg2: memref<1x8x32xf32, #tpu.memory_space<vmem>>, %arg3: memref<1x8x32xf32, #tpu.memory_space<vmem>>, %arg4: memref<32x32xbf16, #tpu.memory_space<vmem>>, %arg5: memref<32x32xbf16, #tpu.memory_space<vmem>>, %arg6: memref<32x32xbf16, #tpu.memory_space<vmem>>, %arg7: memref<32x32xbf16, #tpu.memory_space<vmem>>, %arg8: memref<1x32xf32, #tpu.memory_space<vmem>>, %arg9: memref<1x8x32xf32, #tpu.memory_space<vmem>>) attributes {dimension_semantics = [#tpu.dimension_semantics<parallel>, #tpu.dimension_semantics<parallel>], iteration_bounds = array<i64: 2, 1>, scalar_prefetch = 0 : i64, scratch_operands = 0 : i64, tpu.core_type = #tpu.core_type<tc>, window_params = [{transform_indices = @transform_0, window_bounds = array<i64: 1, 8, 32>}, {transform_indices = @transform_1, window_bounds = array<i64: 1, 8, 32>}, {pipeline_mode = #tpu.pipeline_mode<synchronous>, transform_indices = @transform_2, window_bounds = array<i64: 32, 32>}, {pipeline_mode = #tpu.pipeline_mode<synchronous>, transform_indices = @transform_3, window_bounds = array<i64: 32, 32>}, {pipeline_mode = #tpu.pipeline_mode<synchronous>, transform_indices = @transform_4, window_bounds = array<i64: 32, 32>}, {pipeline_mode = #tpu.pipeline_mode<synchronous>, transform_indices = @transform_5, window_bounds = array<i64: 32, 32>}, {pipeline_mode = #tpu.pipeline_mode<synchronous>, transform_indices = @transform_6, window_bounds = array<i64: 1, 32>}, {transform_indices = @transform_7, window_bounds = array<i64: 1, 8, 32>}]} {
    %c0 = arith.constant 0 : index
    %c0_0 = arith.constant 0 : index
    %c0_1 = arith.constant 0 : index
    %0 = vector.load %arg2[%c0, %c0_0, %c0_1] : memref<1x8x32xf32, #tpu.memory_space<vmem>>, vector<1x8x32xf32>
    %1 = vector.shape_cast %0 : vector<1x8x32xf32> to vector<8x32xf32>
    %2 = arith.truncf %1 : vector<8x32xf32> to vector<8x32xbf16>
    %c0_2 = arith.constant 0 : index
    %c0_3 = arith.constant 0 : index
    %c0_4 = arith.constant 0 : index
    %3 = vector.load %arg3[%c0_2, %c0_3, %c0_4] : memref<1x8x32xf32, #tpu.memory_space<vmem>>, vector<1x8x32xf32>
    %4 = vector.shape_cast %3 : vector<1x8x32xf32> to vector<8x32xf32>
    %5 = arith.truncf %4 : vector<8x32xf32> to vector<8x32xbf16>
    %c0_5 = arith.constant 0 : index
    %c0_6 = arith.constant 0 : index
    %6 = vector.load %arg4[%c0_5, %c0_6] : memref<32x32xbf16, #tpu.memory_space<vmem>>, vector<32x32xbf16>
    %cst = arith.constant dense<0.000000e+00> : vector<8x32xf32>
    %7 = tpu.matmul %2, %6, %cst {dimension_numbers = #tpu.dot_dimension_numbers<[1], [0], [0], [1], [0, 0, 1, 1], [], []>} : vector<8x32xbf16>, vector<32x32xbf16>, vector<8x32xf32> -> vector<8x32xf32>
    %8 = arith.truncf %7 : vector<8x32xf32> to vector<8x32xbf16>
    %c0_7 = arith.constant 0 : index
    %c0_8 = arith.constant 0 : index
    %9 = vector.load %arg5[%c0_7, %c0_8] : memref<32x32xbf16, #tpu.memory_space<vmem>>, vector<32x32xbf16>
    %cst_9 = arith.constant dense<0.000000e+00> : vector<8x32xf32>
    %10 = tpu.matmul %5, %9, %cst_9 {dimension_numbers = #tpu.dot_dimension_numbers<[1], [0], [0], [1], [0, 0, 1, 1], [], []>} : vector<8x32xbf16>, vector<32x32xbf16>, vector<8x32xf32> -> vector<8x32xf32>
    %11 = arith.truncf %10 : vector<8x32xf32> to vector<8x32xbf16>
    %c0_10 = arith.constant 0 : index
    %c0_11 = arith.constant 0 : index
    %12 = vector.load %arg6[%c0_10, %c0_11] : memref<32x32xbf16, #tpu.memory_space<vmem>>, vector<32x32xbf16>
    %cst_12 = arith.constant dense<0.000000e+00> : vector<8x32xf32>
    %13 = tpu.matmul %5, %12, %cst_12 {dimension_numbers = #tpu.dot_dimension_numbers<[1], [0], [0], [1], [0, 0, 1, 1], [], []>} : vector<8x32xbf16>, vector<32x32xbf16>, vector<8x32xf32> -> vector<8x32xf32>
    %14 = arith.truncf %13 : vector<8x32xf32> to vector<8x32xbf16>
    %15 = vector.extract_strided_slice %8 {offsets = [0, 0], sizes = [8, 16], strides = [1, 1]} : vector<8x32xbf16> to vector<8x16xbf16>
    %16 = vector.extract_strided_slice %11 {offsets = [0, 0], sizes = [8, 16], strides = [1, 1]} : vector<8x32xbf16> to vector<8x16xbf16>
    %17 = vector.extract_strided_slice %14 {offsets = [0, 0], sizes = [8, 16], strides = [1, 1]} : vector<8x32xbf16> to vector<8x16xbf16>
    %cst_13 = arith.constant dense<0.000000e+00> : vector<8x8xf32>
    %18 = tpu.matmul %15, %16, %cst_13 {dimension_numbers = #tpu.dot_dimension_numbers<[1], [1], [0], [0], [0, 0, 1, 0], [], []>} : vector<8x16xbf16>, vector<8x16xbf16>, vector<8x8xf32> -> vector<8x8xf32>
    %cst_14 = arith.constant dense<0xFF800000> : vector<8xf32>
    %19 = vector.multi_reduction <maximumf>, %18, %cst_14 [1] : vector<8x8xf32> to vector<8xf32>
    %20 = vector.shape_cast %19 : vector<8xf32> to vector<8x1xf32>
    %21 = vector.broadcast %20 : vector<8x1xf32> to vector<8x8xf32>
    %22 = arith.subf %18, %21 : vector<8x8xf32>
    %23 = math.exp %22 : vector<8x8xf32>
    %cst_15 = arith.constant dense<0.000000e+00> : vector<8xf32>
    %24 = vector.multi_reduction <add>, %23, %cst_15 [1] : vector<8x8xf32> to vector<8xf32>
    %25 = vector.shape_cast %24 : vector<8xf32> to vector<8x1xf32>
    %26 = tpu.reciprocal %25 {approx = true} : vector<8x1xf32> -> vector<8x1xf32>
    %27 = vector.broadcast %26 : vector<8x1xf32> to vector<8x8xf32>
    %28 = arith.mulf %23, %27 : vector<8x8xf32>
    %29 = arith.truncf %28 : vector<8x8xf32> to vector<8x8xbf16>
    %cst_16 = arith.constant dense<0.000000e+00> : vector<8x16xf32>
    %30 = tpu.matmul %29, %17, %cst_16 {dimension_numbers = #tpu.dot_dimension_numbers<[1], [0], [0], [1], [0, 0, 1, 1], [], []>} : vector<8x8xbf16>, vector<8x16xbf16>, vector<8x16xf32> -> vector<8x16xf32>
    %31 = arith.truncf %30 : vector<8x16xf32> to vector<8x16xbf16>
    %c0_17 = arith.constant 0 : index
    %c0_18 = arith.constant 0 : index
    %32 = vector.load %arg7[%c0_17, %c0_18] : memref<32x32xbf16, #tpu.memory_space<vmem>>, vector<16x32xbf16>
    %cst_19 = arith.constant dense<0.000000e+00> : vector<8x32xf32>
    %33 = tpu.matmul %31, %32, %cst_19 {dimension_numbers = #tpu.dot_dimension_numbers<[1], [0], [0], [1], [0, 0, 1, 1], [], []>} : vector<8x16xbf16>, vector<16x32xbf16>, vector<8x32xf32> -> vector<8x32xf32>
    %34 = vector.extract_strided_slice %8 {offsets = [0, 16], sizes = [8, 16], strides = [1, 1]} : vector<8x32xbf16> to vector<8x16xbf16>
    %35 = vector.extract_strided_slice %11 {offsets = [0, 16], sizes = [8, 16], strides = [1, 1]} : vector<8x32xbf16> to vector<8x16xbf16>
    %36 = vector.extract_strided_slice %14 {offsets = [0, 16], sizes = [8, 16], strides = [1, 1]} : vector<8x32xbf16> to vector<8x16xbf16>
    %cst_20 = arith.constant dense<0.000000e+00> : vector<8x8xf32>
    %37 = tpu.matmul %34, %35, %cst_20 {dimension_numbers = #tpu.dot_dimension_numbers<[1], [1], [0], [0], [0, 0, 1, 0], [], []>} : vector<8x16xbf16>, vector<8x16xbf16>, vector<8x8xf32> -> vector<8x8xf32>
    %cst_21 = arith.constant dense<0xFF800000> : vector<8xf32>
    %38 = vector.multi_reduction <maximumf>, %37, %cst_21 [1] : vector<8x8xf32> to vector<8xf32>
    %39 = vector.shape_cast %38 : vector<8xf32> to vector<8x1xf32>
    %40 = vector.broadcast %39 : vector<8x1xf32> to vector<8x8xf32>
    %41 = arith.subf %37, %40 : vector<8x8xf32>
    %42 = math.exp %41 : vector<8x8xf32>
    %cst_22 = arith.constant dense<0.000000e+00> : vector<8xf32>
    %43 = vector.multi_reduction <add>, %42, %cst_22 [1] : vector<8x8xf32> to vector<8xf32>
    %44 = vector.shape_cast %43 : vector<8xf32> to vector<8x1xf32>
    %45 = tpu.reciprocal %44 {approx = true} : vector<8x1xf32> -> vector<8x1xf32>
    %46 = vector.broadcast %45 : vector<8x1xf32> to vector<8x8xf32>
    %47 = arith.mulf %42, %46 : vector<8x8xf32>
    %48 = arith.truncf %47 : vector<8x8xf32> to vector<8x8xbf16>
    %cst_23 = arith.constant dense<0.000000e+00> : vector<8x16xf32>
    %49 = tpu.matmul %48, %36, %cst_23 {dimension_numbers = #tpu.dot_dimension_numbers<[1], [0], [0], [1], [0, 0, 1, 1], [], []>} : vector<8x8xbf16>, vector<8x16xbf16>, vector<8x16xf32> -> vector<8x16xf32>
    %50 = arith.truncf %49 : vector<8x16xf32> to vector<8x16xbf16>
    %c16 = arith.constant 16 : index
    %c0_24 = arith.constant 0 : index
    %51 = vector.load %arg7[%c16, %c0_24] : memref<32x32xbf16, #tpu.memory_space<vmem>>, vector<16x32xbf16>
    %cst_25 = arith.constant dense<0.000000e+00> : vector<8x32xf32>
    %52 = tpu.matmul %50, %51, %cst_25 {dimension_numbers = #tpu.dot_dimension_numbers<[1], [0], [0], [1], [0, 0, 1, 1], [], []>} : vector<8x16xbf16>, vector<16x32xbf16>, vector<8x32xf32> -> vector<8x32xf32>
    %53 = arith.addf %33, %52 : vector<8x32xf32>
    %c0_26 = arith.constant 0 : index
    %c0_27 = arith.constant 0 : index
    %54 = vector.load %arg8[%c0_26, %c0_27] : memref<1x32xf32, #tpu.memory_space<vmem>>, vector<1x32xf32>
    %55 = vector.broadcast %54 : vector<1x32xf32> to vector<8x32xf32>
    %56 = arith.addf %53, %55 : vector<8x32xf32>
    %c0_28 = arith.constant 0 : index
    %c0_29 = arith.constant 0 : index
    %c0_30 = arith.constant 0 : index
    %57 = vector.load %arg9[%c0_28, %c0_29, %c0_30] : memref<1x8x32xf32, #tpu.memory_space<vmem>>, vector<1x8x32xf32>
    %58 = vector.shape_cast %57 : vector<1x8x32xf32> to vector<8x32xf32>
    %59 = vector.shape_cast %56 : vector<8x32xf32> to vector<1x8x32xf32>
    tpu.vector_store %arg9[%c0_28, %c0_29, %c0_30], %59 {strides = array<i32>} : memref<1x8x32xf32, #tpu.memory_space<vmem>>, vector<1x8x32xf32>,
    return
  }
  func.func @transform_0(%arg0: i32, %arg1: i32) -> (i32, i32, i32) {
    %c0_i32 = arith.constant 0 : i32
    %c0_i32_0 = arith.constant 0 : i32
    return %arg0, %arg1, %c0_i32 : i32, i32, i32
  }
  func.func @transform_1(%arg0: i32, %arg1: i32) -> (i32, i32, i32) {
    %c0_i32 = arith.constant 0 : i32
    %c0_i32_0 = arith.constant 0 : i32
    %c0_i32_1 = arith.constant 0 : i32
    return %arg0, %c0_i32, %c0_i32_0 : i32, i32, i32
  }
  func.func @transform_2(%arg0: i32, %arg1: i32) -> (i32, i32) {
    %c0_i32 = arith.constant 0 : i32
    %c0_i32_0 = arith.constant 0 : i32
    %c0_i32_1 = arith.constant 0 : i32
    return %c0_i32, %c0_i32_0 : i32, i32
  }
  func.func @transform_3(%arg0: i32, %arg1: i32) -> (i32, i32) {
    %c0_i32 = arith.constant 0 : i32
    %c0_i32_0 = arith.constant 0 : i32
    %c0_i32_1 = arith.constant 0 : i32
    return %c0_i32, %c0_i32_0 : i32, i32
  }
  func.func @transform_4(%arg0: i32, %arg1: i32) -> (i32, i32) {
    %c0_i32 = arith.constant 0 : i32
    %c0_i32_0 = arith.constant 0 : i32
    %c0_i32_1 = arith.constant 0 : i32
    return %c0_i32, %c0_i32_0 : i32, i32
  }
  func.func @transform_5(%arg0: i32, %arg1: i32) -> (i32, i32) {
    %c0_i32 = arith.constant 0 : i32
    %c0_i32_0 = arith.constant 0 : i32
    %c0_i32_1 = arith.constant 0 : i32
    return %c0_i32, %c0_i32_0 : i32, i32
  }
  func.func @transform_6(%arg0: i32, %arg1: i32) -> (i32, i32) {
    %c0_i32 = arith.constant 0 : i32
    %c0_i32_0 = arith.constant 0 : i32
    %c0_i32_1 = arith.constant 0 : i32
    return %c0_i32, %c0_i32_0 : i32, i32
  }
  func.func @transform_7(%arg0: i32, %arg1: i32) -> (i32, i32, i32) {
    %c0_i32 = arith.constant 0 : i32
    %c0_i32_0 = arith.constant 0 : i32
    return %arg0, %arg1, %c0_i32 : i32, i32, i32
  }
}

</mosaic_0001>

<bundles_post_ra>
// kernel: tpu_custom_call.1
= control target key start
LH: loop header
LB: loop body
LE: loop exit
PB: predicated region body
PF: predicated region fallthrough
CT: control target
= control target key end

     0   :  { %s1939_s0 = inlined_call_operand.hbm [shape: f32[2,8,32], index: 0, kind: input, shape index: {}]   ;;  %s1940_s1 = inlined_call_operand.hbm [shape: f32[2,8,32], index: 1, kind: input, shape index: {}]   ;;  %s1941_s2 = inlined_call_operand.hbm [shape: bf16[32,32], index: 2, kind: input, shape index: {}]   ;;  %s1942_s3 = inlined_call_operand.hbm [shape: bf16[32,32], index: 3, kind: input, shape index: {}]   ;;  %s1943_s4 = inlined_call_operand.hbm [shape: bf16[32,32], index: 4, kind: input, shape index: {}]   ;;  %s1944_s5 = inlined_call_operand.hbm [shape: bf16[32,32], index: 5, kind: input, shape index: {}]   ;;  %s1945_s6 = inlined_call_operand.vmem [shape: f32[1,32], index: 6, kind: input, shape index: {}]   ;;  %s1946_s7 = inlined_call_operand.hbm [shape: f32[2,8,32], index: 7, kind: output, shape index: {}]  }
   0x1   :  { %1948 = sst [smem:[#allocation20_spill]] %s1939_s0 }
   0x2   :  { %1949 = sst [smem:[#allocation21_spill]] %s1941_s2 }
   0x3   :  { %1950 = sst [smem:[#allocation22_spill]] %s1942_s3 }
   0x4   :  { %1951 = sst [smem:[#allocation23_spill]] %s1943_s4 }
   0x5   :  { %1952 = sst [smem:[#allocation24_spill]] %s1944_s5 }
   0x6   :  { %12 = vsyncpa [#allocation3], 0 }
   0x7   :  { %14 = vsyncpa [#allocation3 + $0x1], 0 }
   0x8   :  { %15 = vsyncpa [#allocation6], 0 }
   0x9   :  { %17 = vsyncpa [#allocation6 + $0x1], 0 }
   0xa   :  { %18 = vsyncpa [#allocation9], 0 }
   0xb   :  { %19 = vsyncpa [#allocation12], 0 }
   0xc   :  { %20 = vsyncpa [#allocation4], 0 }
   0xd   :  { %22 = vsyncpa [#allocation4 + $0x1], 0  ;;  %s1640_s24 = smov 0   ;;  %s1642_s25 = smov 0  }
   0xe   :  { %s1644_s26 = smov 0   ;;  %s1646_s27 = smov 0  }
   0xf   :  { %s1648_s28 = smov 0   ;;  %s1650_s29 = smov 0  }
  0x10 LB: > { %s1671_s30 = sadd.s32 4294967295, %s1586_s29   ;;  %p1080_p0 = scmp.ge.s32.totalorder %s1586_s29, 1  ;;  %s1586_s29 = sphi %s1650_s29, %s28_s29   ;;  %s1582_s28 = sphi %s1648_s28, %s1976_s28   ;;  %s1578_s27 = sphi %s1646_s27, %s1975_s27   ;;  %s1574_s26 = sphi %s1644_s26, %s1974_s26   ;;  %s1570_s25 = sphi %s1642_s25, %s1973_s25   ;;  %s1566_s24 = sphi %s1640_s24, %s1972_s24  }
  0x11   : > { %p1947_p1 = scmp.eq.s32.totalorder %s1671_s30, 0  ;;  %p232_p2 = scmp.lt.s32.totalorder %s1586_s29, 3 }
  0x12   : > { %s1588_s9 = smov [#allocation7]   ;;  %s1589_s12 = smov [#allocation8]  }
  0x13   : > { %p1676_p3 = pnand %p1080_p0, %p232_p2  ;;  %s244_s10 = sshll.u32 %s1588_s9, 4  ;;  %s245_s10 = int_to_ptr.vmem [resolvable:$true] %s244_s10 }
  0x14   : > { %s257_s13 = sshll.u32 %s1589_s12, 4  ;;  %s1590_s14 = smov [#allocation10]   ;;  %s258_s13 = int_to_ptr.vmem [resolvable:$true] %s257_s13 }
  0x15   : > { %p1223_p4 = pneg %p1676_p3  ;;  %s270_s15 = sshll.u32 %s1590_s14, 4  ;;  %s271_s15 = int_to_ptr.vmem [resolvable:$true] %s270_s15 }
  0x16   : > { %s1341_s16 = scalar_lea.vmem %s245_s10, 256  ;;  %p1349_p11 = scmp.lt.s32.totalorder %s245_s10, %s245_s10 }
  0x17   : > { %p1685_p6 = pnand %p1223_p4, %p1947_p1  ;;  %p1342_p8 = scmp.ne.s32.totalorder %s245_s10, %s1341_s16 }
  0x18   : > { %p1350_p12 = scmp.lt.s32.totalorder %s1341_s16, %s1341_s16 }
  0x19   : > { %p1332_p7 = pneg %p1685_p6 }
  0x1a   : > { %p1351_p13 = por %p1350_p12, %p1349_p11 }
  0x1b   : > { %p1344_p9 = pnand %p1342_p8, %p1332_p7 }
  0x1d   : > { %p1345_p10 = pneg %p1344_p9 }
  0x1f   : > { %p1352_p0 = pnand %p1351_p13, %p1345_p10 }
  0x21   : > { %1355 = shalt.err (!%p1352_p0)
}
  0x22   : > { %s1591_s17 = smov 64   ;;  %s1592_s18 = smov 4  }
  0x23   : > { %s1955_s2 = sld [smem:[#allocation21_spill]]  ;;  %s1367_s21 = scalar_lea.vmem %s258_s13, 256 }
  0x24   : > { %p1368_p2 = scmp.ne.s32.totalorder %s258_s13, %s1367_s21  ;;  %p1375_p9 = scmp.lt.s32.totalorder %s258_s13, %s258_s13 }
  0x25   : > { %p1376_p10 = scmp.lt.s32.totalorder %s1367_s21, %s1367_s21 }
  0x26   : > { %p1370_p4 = pnand %p1368_p2, %p1332_p7 }
  0x27   : > { %p1377_p11 = por %p1376_p10, %p1375_p9 }
  0x28   : > { %p1371_p8 = pneg %p1370_p4 }
  0x29   : > { %1226 = dma.hbm_to_vmem [thread:$0]  (!%p1685_p6), %s1955_s2, 256, %s245_s10, [#allocation6], %s1591_s17, %s1591_s17, %s1592_s18  }
  0x2a   : > { %p1378_p12 = pnand %p1377_p11, %p1371_p8 }
  0x2c   : > { %1381 = shalt.err (!%p1378_p12)
}
  0x2d   : > { %s1956_s3 = sld [smem:[#allocation22_spill]]  ;;  %s1393_s9 = scalar_lea.vmem %s271_s15, 256 }
  0x2e   : > { %p1394_p13 = scmp.ne.s32.totalorder %s271_s15, %s1393_s9  ;;  %p1401_p4 = scmp.lt.s32.totalorder %s271_s15, %s271_s15 }
  0x2f   : > { %p1402_p8 = scmp.lt.s32.totalorder %s1393_s9, %s1393_s9 }
  0x30   : > { %p1396_p0 = pnand %p1394_p13, %p1332_p7 }
  0x31   : > { %p1403_p9 = por %p1402_p8, %p1401_p4 }
  0x32   : > { %p1397_p2 = pneg %p1396_p0 }
  0x33   : > { %1229 = dma.hbm_to_vmem [thread:$0]  (!%p1685_p6), %s1956_s3, 256, %s258_s13, [#allocation9], %s1591_s17, %s1591_s17, %s1592_s18  }
  0x34   : > { %p1404_p10 = pnand %p1403_p9, %p1397_p2 }
  0x36   : > { %1407 = shalt.err (!%p1404_p10)
}
  0x37   : > { %s1957_s4 = sld [smem:[#allocation23_spill]]  ;;  %s1593_s13 = smov [#allocation11]  }
  0x38   : > { %s283_s14 = sshll.u32 %s1593_s13, 4  ;;  %s284_s14 = int_to_ptr.vmem [resolvable:$true] %s283_s14 }
  0x39   : > { %s1419_s16 = scalar_lea.vmem %s284_s14, 256  ;;  %p1427_p0 = scmp.lt.s32.totalorder %s284_s14, %s284_s14 }
  0x3a   : > { %p1420_p11 = scmp.ne.s32.totalorder %s284_s14, %s1419_s16  ;;  %p1428_p2 = scmp.lt.s32.totalorder %s1419_s16, %s1419_s16 }
  0x3c   : > { %p1422_p12 = pnand %p1420_p11, %p1332_p7  ;;  %p1429_p4 = por %p1428_p2, %p1427_p0 }
  0x3d   : > { %1232 = dma.hbm_to_vmem [thread:$0]  (!%p1685_p6), %s1957_s4, 256, %s271_s15, [#allocation9], %s1591_s17, %s1591_s17, %s1592_s18  }
  0x3e   : > { %p1423_p13 = pneg %p1422_p12 }
  0x40   : > { %p1430_p8 = pnand %p1429_p4, %p1423_p13 }
  0x42   : > { %1433 = shalt.err (!%p1430_p8)
}
  0x43   : > { %s1958_s5 = sld [smem:[#allocation24_spill]]  ;;  %s1079_s11 = sadd.s32 4294967294, %s1586_s29  }
  0x44   : > { %s40_s20 = sadd.s32 1, %s1582_s28  ;;  %s49_s21 = sadd.s32 1, %s1574_s26 }
  0x45   : > { %p42_p7 = scmp.ge.s32.totalorder %s40_s20, 2  ;;  %p56_p9 = scmp.ne.s32.totalorder %s1574_s26, %s1570_s25 }
  0x46   : > { %p57_p10 = scmp.eq.s32.totalorder %s1586_s29, 0  ;;  %p62_p12 = scmp.ne.s32.totalorder %s1570_s25, %s1566_s24 }
  0x47   : > { %s1978_s20 = smov (%p42_p7, %s40_s20), 0  ;;  %p225_p4 = scmp.eq.s32.totalorder %s1079_s11, 1 }
  0x48   : > { %p1743_p11 = por %p57_p10, %p56_p9  ;;  %p1754_p0 = por %p1947_p1, %p62_p12 }
  0x49   : > { %1235 = dma.hbm_to_vmem [thread:$0]  (!%p1685_p6), %s1958_s5, 256, %s284_s14, [#allocation12], %s1591_s17, %s1591_s17, %s1592_s18  }
  0x4a   : > { %s44_s17 = ssub.s32 %s1582_s28, %s1978_s20  ;;  %p219_p6 = scmp.eq.s32.totalorder %s1671_s30, 1 }
  0x4b   : > { %p47_p13 = scmp.eq.s32.totalorder %s44_s17, 0  ;;  %p1765_p8 = por %p225_p4, %p62_p12 }
  0x4c   : > { %p1758_p2 = por %p219_p6, %p56_p9  ;;  %p1251_p7 = scmp.lt.s32.totalorder %s1586_s29, 2 }
  0x4d   : > { %s1763_s9 = scalar_select %p47_p13, %s1574_s26, %s49_s21  }
  0x4e   : > { %s300_s12 = sand.u32 1, %s1574_s26   ;;  %s1087_s13 = sshll.u32 %s1582_s28, 7 }
  0x4f   : > { %s1086_s14 = sshll.u32 %s300_s12, 3  ;;  %s1963_s0 = sld [smem:[#allocation20_spill]] }
  0x50   : > { %s304_s17 = scalar_lea.vmem [#allocation2], %s1086_s14  ;;  %p1777_p9 = pnand %p1251_p7, %p1743_p11 }
  0x51   : > { %s312_s2 = sshll.u32 %s304_s17, 4  ;;  %s1784_s4 = scalar_lea.hbm %s1940_s1, %s1087_s13  ;;  %s313_s2 = int_to_ptr.vmem [resolvable:$true] %s312_s2 }
  0x52   : > { %s301_s5 = scalar_lea.sflag [#allocation3], %s300_s12  ;;  %p1436_p10 = pneg %p1777_p9 }
  0x53   : > { %s1447_s16 = scalar_lea.vmem %s313_s2, 128  ;;  %s1594_s22 = smov [#allocation2]  }
  0x54   : > { %p1448_p12 = scmp.ne.s32.totalorder %s313_s2, %s1447_s16  ;;  %s1452_s15 = sshll.u32 %s1594_s22, 4  ;;  %s1453_s15 = int_to_ptr.vmem [resolvable:$false] %s1452_s15 }
  0x55   : > { %s310_s19 = scalar_lea.hbm %s1963_s0, %s1087_s13  ;;  %s1454_s17 = scalar_lea.vmem %s1453_s15, 256 }
  0x56   : > { %p1450_p6 = pnand %p1448_p12, %p1436_p10  ;;  %p1455_p13 = scmp.lt.s32.totalorder %s313_s2, %s1453_s15 }
  0x57   : > { %p1456_p4 = scmp.lt.s32.totalorder %s1454_s17, %s1447_s16 }
  0x58   : > { %p1451_p11 = pneg %p1450_p6 }
  0x59   : > { %p1457_p7 = por %p1456_p4, %p1455_p13 }
  0x5b   : > { %p1458_p5 = pnand %p1457_p7, %p1451_p11 }
  0x5d   : > { %1461 = shalt.err (!%p1458_p5)
}
  0x5e   : > { %1239 = dma.hbm_to_vmem [thread:$0]  (!%p1777_p9), %s310_s19, 128, %s313_s2, %s301_s5  }
  0x5f   : > { %s319_s12 = sand.u32 1, %s1586_s29   ;;  %s323_s13 = scalar_lea.vmem [#allocation5], %s1086_s14 }
  0x60   : > { %s330_s11 = sshll.u32 %s323_s13, 4  ;;  %s320_s21 = scalar_lea.sflag [#allocation6], %s319_s12  ;;  %s331_s11 = int_to_ptr.vmem [resolvable:$true] %s330_s11 }
  0x61   : > { %s1475_s0 = scalar_lea.vmem %s331_s11, 128  ;;  %s1595_s16 = smov [#allocation5]  }
  0x62   : > { %p1476_p12 = scmp.ne.s32.totalorder %s331_s11, %s1475_s0  ;;  %s1480_s22 = sshll.u32 %s1595_s16, 4  ;;  %s1481_s22 = int_to_ptr.vmem [resolvable:$false] %s1480_s22 }
  0x63   : > { %s1482_s15 = scalar_lea.vmem %s1481_s22, 256  ;;  %p1483_p5 = scmp.lt.s32.totalorder %s331_s11, %s1481_s22 }
  0x64   : > { %p1478_p6 = pnand %p1476_p12, %p1436_p10  ;;  %p1484_p11 = scmp.lt.s32.totalorder %s1482_s15, %s1475_s0 }
  0x66   : > { %p1479_p1 = pneg %p1478_p6  ;;  %p1485_p13 = por %p1484_p11, %p1483_p5 }
  0x68   : > { %p1486_p4 = pnand %p1485_p13, %p1479_p1 }
  0x6a   : > { %1489 = shalt.err (!%p1486_p4)
}
  0x6b   : > { %1242 = dma.hbm_to_vmem [thread:$0]  (!%p1777_p9), %s1784_s4, 128, %s331_s11, %s320_s21  }
  0x6c   : > { %339 = sbr.rel (%p1676_p3) target bundleno = 1367 (0x557), region = 48  ;;  %s1803_s2 = sand.u32 (!%p1676_p3), 1, %s1570_s25  }
  0x6d   : > { %s1806_s5 = sshll.u32 (!%p1676_p3), %s1803_s2, 3  ;;  %s342_s0 = scalar_lea.sflag (!%p1676_p3), [#allocation3], %s1803_s2 }
  0x6e   : > { %s345_s14 = scalar_lea.vmem (!%p1676_p3), [#allocation2], %s1806_s5 }
  0x71   : > { %1541 = dma.done.wait (%p1754_p0), %s342_s0, 128  }
  0x72   : > { %1543 = vsyncadd (%p1754_p0), %s342_s0, 4294967168  ;;  %s350_s3 = sand.u32 1, %s1671_s30   ;;  %s354_s8 = scalar_lea.vmem [#allocation5], %s1806_s5 }
  0x73   : > { %s351_s4 = scalar_lea.sflag [#allocation6], %s350_s3 }
  0x74   : > { %1545 = dma.done.wait (%p1754_p0), %s351_s4, 128  }
  0x75   : > { %1547 = vsyncadd (%p1754_p0), %s351_s4, 4294967168  ;;  %p1965_p1 = scmp.eq.s32.totalorder %s1671_s30, 0 }
  0x77   : > { %1549 = dma.done.wait (%p1965_p1), [#allocation6], 256   ;;  %p1966_p3 = pmov %p1965_p1 }
  0x78   : > { %p1967_p9 = pmov %p1965_p1 }
  0x79   : > { %1551 = vsyncadd (%p1966_p3), [#allocation6], 4294967040 }
  0x7a   : > { %1553 = dma.done.wait (%p1967_p9), [#allocation9], 512   ;;  %p1968_p10 = pmov %p1965_p1 }
  0x7b   : > { %p1969_p7 = pmov %p1965_p1 }
  0x7c   : > { %1555 = vsyncadd (%p1968_p10), [#allocation9], 4294966784 }
  0x7d   : > { %1557 = dma.done.wait (%p1969_p7), [#allocation12], 256   ;;  %p1970_p12 = pmov %p1965_p1 }
  0x7e   : > { %v1596_v0 = vmov 0.0   ;;  %vm1597_vm0 = vmmov 0   ;;  %v1314_v1 = vld [vmem:[#allocation8 + $0x8] sm:$0xff]   ;;  %v1315_v2 = vld [vmem:[#allocation7 + $0x8] sm:$0xff]   ;;  %v1316_v3 = vld [vmem:[#allocation8] sm:$0xff]   ;;  %vm427_vm1 = vcmask 261120  }
  0x7f   : > { %1559 = vsyncadd (%p1970_p12), [#allocation12], 4294967040  ;;  %1149 = vmatprep.subr.bf16.mxu1 %v1596_v0  ;;  %1141 = vmatprep.subr.bf16.mxu0 %v1596_v0  ;;  %v1317_v4 = vld [vmem:[#allocation7] sm:$0xff]   ;;  %v409_v5 = vld [vmem:[%s354_s8] sm:$0xff]  ;;  %vm589_vm2 = vcmask 130048   ;;  %s1598_s30 = smov 112  }
  0x80   : > { %1153 = vmatprep.mubr.msk.bf16.mxu1 %vm1597_vm0, %v1596_v0  ;;  %1145 = vmatprep.mubr.msk.bf16.mxu0 %vm1597_vm0, %v1596_v0  ;;  %v407_v6 = vld [vmem:[%s345_s14] sm:$0xff]  ;;  %v410_v7 = vpack.c.bf16 %v409_v5, %v409_v5  ;;  %vm636_vm3 = vcmask 64512   ;;  %vm652_vm4 = vcmask 1043456   ;;  %v1321_v55 = vld [vmem:[#allocation11 + $0x8] sm:$0xff]   ;;  %v1320_v61 = vld [vmem:[#allocation11] sm:$0xff]   ;;  %s1117_s17 = sshll.u32 %s1578_s27, 7 }
  0x81   : > { %1150 = vmatpush3.bf16.msra.mxu1 %v1314_v1  ;;  %1142 = vmatpush3.bf16.msra.mxu0 %v1315_v2  ;;  %v408_v8 = vpack.c.bf16 %v407_v6, %v407_v6  ;;  %v1318_v20 = vld [vmem:[#allocation10 + $0x8] sm:$0xff]   ;;  %v1319_v21 = vld [vmem:[#allocation10] sm:$0xff]   ;;  %s405_s12 = scalar_lea.vmem [#allocation13], %s1806_s5  ;;  %s1890_s16 = scalar_lea.hbm %s1946_s7, %s1117_s17 }
  0x82   : > { %1151 = vmatprep.subr.bf16.mxu1 %v1596_v0  ;;  %1143 = vmatprep.subr.bf16.mxu0 %v1596_v0  ;;  %s937_s13 = sshll.u32 %s405_s12, 4  ;;  %s923_s27 = scalar_lea.sflag [#allocation4], %s1803_s2  ;;  %s1892_s13 = int_to_ptr.vmem [resolvable:$true] %s937_s13 }
  0x83   : > { %s1490_s22 = scalar_lea.vmem %s1892_s13, 128  ;;  %s1599_s15 = smov [#allocation13]  }
  0x84   : > { %p1491_p0 = scmp.ne.s32.totalorder %s1892_s13, %s1490_s22  ;;  %s1494_s5 = sshll.u32 %s1599_s15, 4  ;;  %s1495_s5 = int_to_ptr.vmem [resolvable:$false] %s1494_s5 }
  0x85   : > { %1152 = vmatpush3.bf16.msra.mxu1 %v1316_v3  ;;  %1144 = vmatpush3.bf16.msra.mxu0 %v1317_v4  ;;  %s1496_s0 = scalar_lea.vmem %s1495_s5, 256  ;;  %p1497_p11 = scmp.lt.s32.totalorder %s1892_s13, %s1495_s5 }
  0x86   : > { %1165 = vmatprep.subr.bf16.mxu1 %v1596_v0  ;;  %1157 = vmatprep.subr.bf16.mxu0 %v1596_v0  ;;  %p1492_p6 = pnand %p1491_p0, %p1758_p2  ;;  %p1498_p13 = scmp.lt.s32.totalorder %s1496_s0, %s1490_s22 }
  0x88   : > { %1154 = vmatmul.mubr.msk.bf16.vlgmr.msra.gmra.mxu1 %vm427_vm1, %v410_v7  ;;  %1146 = vmatmul.mubr.msk.bf16.vlgmr.msra.gmra.mxu0 %vm427_vm1, %v408_v8  ;;  %p1493_p5 = pneg %p1492_p6  ;;  %p1499_p4 = por %p1498_p13, %p1497_p11 }
  0x89   : > { %1167 = vmatprep.mubr.msk.bf16.mxu1 %vm1597_vm0, %v1596_v0  ;;  %1161 = vmatprep.mubr.msk.bf16.mxu0 %vm1597_vm0, %v1596_v0 }
  0x8a   : > { %1158 = vmatpush3.bf16.msra.mxu0 %v1318_v20  ;;  %p1500_p1 = pnand %p1499_p4, %p1493_p5 }
  0x8b   : > { %1159 = vmatprep.subr.bf16.mxu0 %v1596_v0 }
  0x8e   : > { %1160 = vmatpush3.bf16.msra.mxu0 %v1319_v21 }
  0x8f   : > { %1171 = vmatprep.subr.bf16.mxu0 %v1596_v0 }
  0x91   : > { %1162 = vmatmul.mubr.msk.bf16.vlgmr.msra.gmra.mxu0 %vm427_vm1, %v410_v7 }
  0x92   : > { %1173 = vmatprep.mubr.msk.bf16.mxu0 %vm1597_vm0, %v1596_v0 }
 0x148   : > { %v525_v9 = vpop.f32.mrf.mxu1  ;;  %v465_v11 = vpop.f32.mrf.mxu0 }
 0x149   : > { %v531_v10 = vpack.c.bf16 %v525_v9, %v525_v9  ;;  %v471_v14 = vpack.c.bf16 %v465_v11, %v465_v11 }
 0x14a   : > { %v1155_v12 = vpop.f32.mrf.mxu1  ;;  %v1147_v15 = vpop.f32.mrf.mxu0 }
 0x14b   : > { %v594_v13 = vsel %vm589_vm2, %v531_v10, 0  ;;  %703 = vrot.lane.b32.xlu0 %v531_v10, %s1598_s30 }
 0x14c   : > { %v528_v16 = vpop.f32.mrf.mxu1  ;;  %1166 = vmatpush3.bf16.xpose.msra.mxu1 %v594_v13  ;;  %v468_v17 = vpop.f32.mrf.mxu0 }
 0x14d   : > { %1177 = vmatprep.subr.bf16.mxu1 %v1596_v0 }
 0x14e   : > { %v1156_v18 = vpop.f32.mrf.mxu1  ;;  %v1148_v19 = vpop.f32.mrf.mxu0 }
 0x14f   : > { %700 = vrot.lane.b32.xlu0 %v471_v14, %s1598_s30 }
 0x151   : > { %v582_v40 = vpop.f32.mrf.mxu0 }
 0x152   : > { %v588_v41 = vpack.c.bf16 %v582_v40, %v582_v40 }
 0x153   : > { %1168 = vmatmul.mubr.msk.bf16.vlgmr.msra.gmra.mxu1 %vm589_vm2, %v471_v14  ;;  %v1163_v42 = vpop.f32.mrf.mxu0  ;;  %v1115_v14 = vld [vmem:[%s1945_s6] ss:$0 sm:$0xff] }
 0x154   : > { %1179 = vmatprep.mubr.msk.bf16.mxu1 %vm1597_vm0, %v1596_v0  ;;  %v654_v43 = vsel %vm652_vm4, %v588_v41, 0 }
 0x155   : > { %v585_v44 = vpop.f32.mrf.mxu0  ;;  %1172 = vmatpush3.bf16.msra.mxu0 %v654_v43 }
 0x156   : > { %1183 = vmatprep.subr.bf16.mxu0 %v1596_v0 }
 0x157   : > { %v1164_v45 = vpop.f32.mrf.mxu0 }
 0x1bd   : > { %v704_v22 = vpop.permute.xlu0 %703 }
 0x1be   : > { %v709_v23 = vsel %vm589_vm2, %v704_v22, 0 }
 0x1bf   : > { %1178 = vmatpush3.bf16.xpose.msra.mxu1 %v709_v23 }
 0x1c0   : > { %1189 = vmatprep.subr.bf16.mxu1 %v1596_v0 }
 0x1c1   : > { %v701_v24 = vpop.permute.xlu0 %700 }
 0x1c6   : > { %1180 = vmatmul.mubr.msk.bf16.vlgmr.msra.gmra.mxu1 %vm589_vm2, %v701_v24 }
 0x1c7   : > { %1191 = vmatprep.mubr.msk.bf16.mxu1 %vm1597_vm0, %v1596_v0  ;;  %1190 = vmatpush3.bf16.msra.mxu1 %v1321_v55 }
 0x213   : > { %v630_v25 = vpop.f32.mrf.mxu1 }
 0x214   : > { %v637_v26 = vsel %vm636_vm3, %v630_v25, -inf }
 0x215   : > { %638 = vmax.xlane.f32.xlu1 %v637_v26  ;;  %v1169_v27 = vpop.f32.mrf.mxu1 }
 0x217   : > { %v633_v28 = vpop.f32.mrf.mxu1 }
 0x219   : > { %v1170_v29 = vpop.f32.mrf.mxu1 }
 0x286   : > { %v745_v30 = vpop.f32.mrf.mxu1 }
 0x287   : > { %v751_v31 = vsel %vm636_vm3, %v745_v30, -inf }
 0x288   : > { %752 = vmax.xlane.f32.xlu1 %v751_v31  ;;  %v1181_v32 = vpop.f32.mrf.mxu1 }
 0x28a   : > { %v748_v33 = vpop.f32.mrf.mxu1 }
 0x28c   : > { %v1182_v34 = vpop.f32.mrf.mxu1 }
 0x29e   : > { %v639_v35 = vpop.xlane.xlu1 %638 }
 0x29f   : > { %v640_v36 = vsub.f32 %v630_v25, %v639_v35 }
 0x2a1   : > { %v641_v37 = vmul.f32 1.442695, %v640_v36 }
 0x2a3   : > { %1322 = vpow2.f32 %v641_v37 }
 0x2b0   : > { %v1323_v38 = vpop.eup %1322 }
 0x2b1   : > { %v643_v39 = vsel %vm636_vm3, %v1323_v38, 0.0 }
 0x2b2   : > { %644 = vadd.xlane.f32.xlu0 %v643_v39 }
 0x311   : > { %v753_v46 = vpop.xlane.xlu1 %752 }
 0x312   : > { %v754_v47 = vsub.f32 %v745_v30, %v753_v46 }
 0x314   : > { %v755_v48 = vmul.f32 1.442695, %v754_v47 }
 0x316   : > { %1324 = vpow2.f32 %v755_v48 }
 0x323   : > { %v1325_v49 = vpop.eup %1324 }
 0x324   : > { %v757_v50 = vsel %vm636_vm3, %v1325_v49, 0.0 }
 0x325   : > { %758 = vadd.xlane.f32.xlu1 %v757_v50 }
 0x336   : > { %764 = vrot.lane.b32.xlu1 %v588_v41, %s1598_s30 }
 0x33b   : > { %v645_v51 = vpop.xlane.xlu0 %644 }
 0x33c   : > { %1326 = vrcp.f32 %v645_v51 }
 0x349   : > { %v1327_v52 = vpop.eup %1326 }
 0x34a   : > { %v647_v53 = vmul.f32 %v1327_v52, %v1323_v38 }
 0x34c   : > { %v648_v54 = vpack.c.bf16 %v647_v53, %v647_v53 }
 0x34e   : > { %1174 = vmatmul.mubr.msk.bf16.vlgmr.msra.gmra.mxu0 %vm636_vm3, %v648_v54 }
 0x34f   : > { %1185 = vmatprep.mubr.msk.bf16.mxu0 %vm1597_vm0, %v1596_v0 }
 0x3ae   : > { %v759_v56 = vpop.xlane.xlu1 %758 }
 0x3af   : > { %1328 = vrcp.f32 %v759_v56 }
 0x3b2   : > { %v765_v57 = vpop.permute.xlu1 %764 }
 0x3b3   : > { %v770_v58 = vsel %vm652_vm4, %v765_v57, 0 }
 0x3b4   : > { %1184 = vmatpush3.bf16.msra.mxu0 %v770_v58 }
 0x3b5   : > { %1195 = vmatprep.subr.bf16.mxu0 %v1596_v0 }
 0x3bc   : > { %v1329_v59 = vpop.eup %1328 }
 0x3bd   : > { %v761_v60 = vmul.f32 %v1329_v59, %v1325_v49 }
 0x3bf   : > { %v762_v62 = vpack.c.bf16 %v761_v60, %v761_v60 }
 0x3c1   : > { %1186 = vmatmul.mubr.msk.bf16.vlgmr.msra.gmra.mxu0 %vm636_vm3, %v762_v62 }
 0x3c2   : > { %1196 = vmatpush3.bf16.msra.mxu0 %v1320_v61  ;;  %1197 = vmatprep.mubr.msk.bf16.mxu0 %vm1597_vm0, %v1596_v0 }
 0x40e   : > { %v690_v63 = vpop.f32.mrf.mxu0 }
 0x40f   : > { %v696_v1 = vpack.c.bf16 %v690_v63, %v690_v63 }
 0x410   : > { %v1175_v2 = vpop.f32.mrf.mxu0 }
 0x411   : > { %1198 = vmatmul.mubr.msk.bf16.vlgmr.msra.gmra.mxu0 %vm589_vm2, %v696_v1 }
 0x412   : > { %v693_v3 = vpop.f32.mrf.mxu0 }
 0x414   : > { %v1176_v4 = vpop.f32.mrf.mxu0 }
 0x481   : > { %v806_v5 = vpop.f32.mrf.mxu0 }
 0x482   : > { %v812_v6 = vpack.c.bf16 %v806_v5, %v806_v5 }
 0x483   : > { %v1187_v7 = vpop.f32.mrf.mxu0 }
 0x484   : > { %1192 = vmatmul.mubr.msk.bf16.vlgmr.msra.gmra.mxu1 %vm589_vm2, %v812_v6 }
 0x485   : > { %v809_v8 = vpop.f32.mrf.mxu0 }
 0x487   : > { %v1188_v9 = vpop.f32.mrf.mxu0 }
 0x4d1   : > { %v907_v10 = vpop.f32.mrf.mxu0 }
 0x4d3   : > { %v1199_v11 = vpop.f32.mrf.mxu0 }
 0x4d5   : > { %v910_v0 = vpop.f32.mrf.mxu0 }
 0x4d7   : > { %v1200_v12 = vpop.f32.mrf.mxu0 }
 0x544   : > { %v858_v13 = vpop.f32.mrf.mxu1 }
 0x545   : > { %v908_v15 = vadd.f32 %v907_v10, %v858_v13 }
 0x546   : > { %v1193_v16 = vpop.f32.mrf.mxu1 }
 0x547   : > { %v920_v17 = vadd.f32 %v1115_v14, %v908_v15 }
 0x548   : > { %v861_v18 = vpop.f32.mrf.mxu1 }
 0x549   : > { %921 = vst.msk [vmem:[%s405_s12] sm:$0xff] %vm427_vm1, %v920_v17 }
 0x54a   : > { %v1194_v19 = vpop.f32.mrf.mxu1 }
 0x54b   : > { %1503 = shalt.err (!%p1500_p1)
}
 0x54c   : > { %s1504_s14 = scalar_lea.hbm %s1890_s16, 128  ;;  %s1508_s4 = scalar_lea.hbm %s1946_s7, 256 }
 0x54d   : > { %p1505_p3 = scmp.ne.s32.totalorder %s1890_s16, %s1504_s14  ;;  %p1509_p7 = scmp.lt.s32.totalorder %s1890_s16, %s1946_s7 }
 0x54e   : > { %p1510_p12 = scmp.lt.s32.totalorder %s1508_s4, %s1504_s14 }
 0x54f   : > { %p1506_p9 = pnand %p1505_p3, %p1758_p2 }
 0x550   : > { %p1511_p0 = por %p1510_p12, %p1509_p7 }
 0x551   : > { %p1507_p10 = pneg %p1506_p9 }
 0x553   : > { %p1512_p6 = pnand %p1511_p0, %p1507_p10 }
 0x555   : > { %1515 = shalt.err (!%p1512_p6)
}
 0x556   : > { %1221 = dma.vmem_to_hbm [thread:$0]  (%p1758_p2), %s1892_s13, 128, %s1890_s16, %s923_s27  }
 0x557 PF: > { %s949_s18 = sand.u32 1, %s1566_s24   ;;  %p1971_p5 = scmp.ge.s32.totalorder %s1586_s29, 2 }
 0x558   : > { %s950_s19 = scalar_lea.sflag [#allocation4], %s949_s18 }
 0x559   : > { %p1244_p11 = pnand %p1971_p5, %p1765_p8 }
 0x55b   : > { %p1245_p13 = pneg %p1244_p11 }
 0x55d   : > { %1561 = dma.done.wait (%p1245_p13), %s950_s19, 128  }
 0x55e   : > { %1563 = vsyncadd (%p1245_p13), %s950_s19, 4294967168  ;;  %s28_s29 = sadd.s32 1, %s1586_s29   ;;  %s1972_s24 = smov %s1570_s25 }
 0x55f   : > { %p25_p4 = scmp.ge.s32.totalorder %s28_s29, 4   ;;  %s1973_s25 = smov %s1574_s26 }
 0x560   : > { %s1974_s26 = smov %s1763_s9  ;;  %s1975_s27 = smov %s1582_s28 }
 0x561   : > { %s1976_s28 = smov %s1978_s20  ;;  %27 = sbr.rel (!%p25_p4) target bundleno = 16 (0x10), region = 122 }
 0x566   :  { %955 = vsyncpa [#allocation3], 1 }
 0x567   :  { %957 = vsyncpa [#allocation3 + $0x1], 1 }
 0x568   :  { %958 = vsyncpa [#allocation6], 1 }
 0x569   :  { %960 = vsyncpa [#allocation6 + $0x1], 1 }
 0x56a   :  { %961 = vsyncpa [#allocation9], 1 }
 0x56b   :  { %962 = vsyncpa [#allocation12], 1 }
 0x56c   :  { %963 = vsyncpa [#allocation4], 1 }
 0x56d   :  { %965 = vsyncpa [#allocation4 + $0x1], 1 }

</bundles_post_ra>
